<compile_context>
chip_gen: v5e
topology: v5e:2x2
jax: 0.10.0
libtpu: 0.0.40
codegen_flags: <defaults>
</compile_context>

<pallas_src>
import jax
import jax.numpy as jnp
from jax.experimental import pallas as pl
from jax.experimental.pallas import tpu as pltpu

# NOTE: MLP activation assumed to be LeakyReLU(negative_slope=0.1) (standard for
# biaffine parsers); dropout is a no-op in forward/eval.
NEG_SLOPE = 0.1


def _leaky_relu(v):
    return jnp.where(v > 0, v, NEG_SLOPE * v)


def _round_up(x, m):
    return (x + m - 1) // m * m


def _vmem_limit_bytes():
    # Generation-aware VMEM budget: ~7/8 of physical per-core VMEM, capped at
    # 112 MiB (v5e/v6e have 128 MiB; v7x has 64 MiB -> 56 MiB budget).
    try:
        cap = int(pltpu.get_tpu_info().vmem_capacity_bytes)
    except Exception:  # pragma: no cover - conservative fallback
        cap = 64 * 1024 * 1024
    return min(cap * 7 // 8, 112 * 1024 * 1024)


def label_biaffine_kernel(lab_h_ref, lab_d_ref,
                          wh_ref, bh_ref, wd_ref, bd_ref,
                          u3_ref, wxb_ref, wby_ref, wbb_ref,
                          out_ref):
    # Shapes (E, M padded to 128 lanes; label dim padded only to 8):
    #   lab_h_ref / lab_d_ref : (tn, Ep)      bf16
    #   wh_ref / wd_ref       : (Ep, Mp)      bf16
    #   bh_ref / bd_ref       : (1, Mp)       f32
    #   u3_ref                : (L, Mp, Mp)   bf16   u3[o, i, j] = U[o, i, j]
    #   wxb_ref / wby_ref     : (Mp, L8)      bf16   bias_y column / bias_x row of U
    #   wbb_ref               : (1, L8)       f32    U[o, M, M]
    #   out_ref               : (tn, L8)      f32

    # Head / dependent MLPs (Linear + leaky_relu). bf16 MXU operands, f32 acc,
    # f32 elementwise (safe on v5e: no bf16 VPU there).
    y_f32 = _leaky_relu(
        jnp.dot(lab_h_ref[...], wh_ref[...], preferred_element_type=jnp.float32)
        + bh_ref[...])
    x_f32 = _leaky_relu(
        jnp.dot(lab_d_ref[...], wd_ref[...], preferred_element_type=jnp.float32)
        + bd_ref[...])
    x = x_f32.astype(jnp.bfloat16)
    y = y_f32.astype(jnp.bfloat16)

    tn = x_f32.shape[0]
    num_labels = u3_ref.shape[0]      # true label count (static)
    l8 = out_ref.shape[1]             # label count padded to a multiple of 8

    # Biaffine main term, one label at a time (static unroll; parsers have a few
    # dozen labels).  tn stays on sublanes for every op: MXU dot (tn,Mp)@(Mp,Mp),
    # VPU multiply by y, XLU lane-reduce.  No reshape / sublane relayout, live
    # intermediate is a single (tn, Mp) tile.
    # NOTE: with Mp = 128 the contraction half-fills the 256-deep MXU on v6e/v7x;
    # expect ~50% of bf16 peak for this dot (full utilization on v5e's 128-wide MXU).
    cols = []
    for o in range(num_labels):
        t_o = jnp.dot(x, u3_ref[o], preferred_element_type=jnp.float32)   # (tn, Mp)
        cols.append(jnp.sum(t_o * y_f32, axis=-1, keepdims=True))         # (tn, 1)
    if l8 > num_labels:
        cols.append(jnp.zeros((tn, l8 - num_labels), jnp.float32))
    main = jnp.concatenate(cols, axis=-1)                                  # (tn, L8)

    # Bias-augmentation terms (no in-kernel concat of ones columns needed):
    #   + x @ U[:, :, M]^T   (bias_y)
    #   + y @ U[:, M, :]^T   (bias_x)
    #   + U[:, M, M]
    s = (main
         + jnp.dot(x, wxb_ref[...], preferred_element_type=jnp.float32)
         + jnp.dot(y, wby_ref[...], preferred_element_type=jnp.float32)
         + wbb_ref[...])
    out_ref[...] = s.astype(out_ref.dtype)


def label_biaffine_forward(h, indexes, heads, params, *, tn=256):
    """h: (B, S, E) f32; indexes: (>=2, N) int32; heads: (N,) int32.

    params: wh (E, M), bh (M,), wd (E, M), bd (M,), U (L, M+1, M+1).
    Returns (N, L) f32 label scores.
    """
    wh, bh, wd, bd, U = (params["wh"], params["bh"], params["wd"], params["bd"],
                         params["U"])
    E, M = wh.shape
    L = U.shape[0]
    assert U.shape == (L, M + 1, M + 1)

    Ep = _round_up(E, 128)
    Mp = _round_up(M, 128)
    L8 = _round_up(L, 8)      # compute/store label padding: 8 sublane-multiple only

    # --- Gather of (sentence, token) pairs: plain JAX, but from a bf16 view of h
    # so XLA fuses gather+convert(+pad) into a single pass (see TODO above for the
    # fully fused in-kernel DMA gather).
    h16 = h.astype(jnp.bfloat16)
    lab_h = h16[indexes[0, :], heads, :]          # (N, E) bf16
    lab_d = h16[indexes[0, :], indexes[1, :], :]  # (N, E) bf16
    N = lab_h.shape[0]

    # Tile size over N: sweep 128/256/512 for real shapes.  Shrink for tiny N and
    # keep at least 2 grid steps when there is enough work so both v7x TensorCores
    # get a share under dimension_semantics=("parallel",).
    tn = _round_up(max(int(tn), 8), 8)
    tn = min(tn, _round_up(N, 8))
    Np = _round_up(N, tn)
    if Np // tn < 2 and Np >= 16:
        tn = _round_up(Np // 2, 8)
        Np = _round_up(N, tn)

    def pad2(a, r, c):
        return jnp.pad(a, ((0, r - a.shape[0]), (0, c - a.shape[1])))

    # Zero-padding of feature dims contributes nothing to dots, and
    # leaky_relu(0 + 0 bias) = 0 keeps padded MLP channels exactly zero.
    lab_h_p = pad2(lab_h, Np, Ep)
    lab_d_p = pad2(lab_d, Np, Ep)

    wh_p = pad2(wh, Ep, Mp).astype(jnp.bfloat16)
    wd_p = pad2(wd, Ep, Mp).astype(jnp.bfloat16)
    bh_p = jnp.pad(bh, (0, Mp - M)).reshape(1, Mp).astype(jnp.float32)
    bd_p = jnp.pad(bd, (0, Mp - M)).reshape(1, Mp).astype(jnp.float32)

    # Bilinear weight, kept in its natural (L, M, M) layout (padded to Mp lanes /
    # sublanes); the kernel slices one (Mp, Mp) slab per label (static, free).
    u3 = jnp.pad(U[:, :M, :M],
                 ((0, 0), (0, Mp - M), (0, Mp - M))).astype(jnp.bfloat16)  # (L, Mp, Mp)
    wxb = pad2(U[:, :M, M].T, Mp, L8).astype(jnp.bfloat16)                 # (Mp, L8)
    wby = pad2(U[:, M, :M].T, Mp, L8).astype(jnp.bfloat16)                 # (Mp, L8)
    wbb = jnp.pad(U[:, M, M], (0, L8 - L)).reshape(1, L8).astype(jnp.float32)

    full = lambda shape: pl.BlockSpec(shape, lambda i, _n=len(shape): (0,) * _n)
    grid = (Np // tn,)

    # Advisory cost for XLA's scheduler around the custom call.
    flops = 2 * Np * (2 * Ep * Mp + L * Mp * Mp + 2 * Mp * L8)
    bytes_accessed = (
        2 * (lab_h_p.size + lab_d_p.size + wh_p.size + wd_p.size
             + u3.size + wxb.size + wby.size)                      # bf16 operands
        + 4 * (bh_p.size + bd_p.size + wbb.size + Np * L8))        # f32 bias / out

    out_p = pl.pallas_call(
        label_biaffine_kernel,
        out_shape=jax.ShapeDtypeStruct((Np, L8), jnp.float32),
        grid_spec=pltpu.PrefetchScalarGridSpec(
            num_scalar_prefetch=0,
            grid=grid,
            in_specs=[
                pl.BlockSpec((tn, Ep), lambda i: (i, 0)),   # lab_h tile
                pl.BlockSpec((tn, Ep), lambda i: (i, 0)),   # lab_d tile
                full((Ep, Mp)),                             # wh
                full((1, Mp)),                              # bh
                full((Ep, Mp)),                             # wd
                full((1, Mp)),                              # bd
                full((L, Mp, Mp)),                          # u3 (bilinear weight)
                full((Mp, L8)),                             # wxb
                full((Mp, L8)),                             # wby
                full((1, L8)),                              # wbb
            ],
            out_specs=pl.BlockSpec((tn, L8), lambda i: (i, 0)),
        ),
        compiler_params=pltpu.CompilerParams(
            dimension_semantics=("parallel",),              # shards N across v7x TCs
            vmem_limit_bytes=_vmem_limit_bytes(),
        ),
        cost_estimate=pl.CostEstimate(flops=flops, transcendentals=0,
                                      bytes_accessed=bytes_accessed),
    )(lab_h_p, lab_d_p, wh_p, bh_p, wd_p, bd_p, u3, wxb, wby, wbb)

    return out_p[:N, :L]


def _reference(h, indexes, heads, params):
    wh, bh, wd, bd, U = (params["wh"], params["bh"], params["wd"], params["bd"],
                         params["U"])
    lab_h = h[indexes[0, :], heads, :]
    lab_d = h[indexes[0, :], indexes[1, :], :]
    y = _leaky_relu(lab_h @ wh + bh)
    x = _leaky_relu(lab_d @ wd + bd)
    ones = jnp.ones((x.shape[0], 1), x.dtype)
    x_aug = jnp.concatenate([x, ones], axis=-1)
    y_aug = jnp.concatenate([y, ones], axis=-1)
    return jnp.einsum("ni,oij,nj->no", x_aug, U, y_aug)


if __name__ == "__main__":
    # Small demo shapes: batch=2, seq=8, encoder_dim=32, mlp_dim=32, labels_dim=8.
    B, S, E, M, L = 2, 8, 32, 32, 8
    N = B * S

    key = jax.random.PRNGKey(0)
    k_h, k_wh, k_bh, k_wd, k_bd, k_u, k_heads = jax.random.split(key, 7)

    h = jax.random.normal(k_h, (B, S, E), dtype=jnp.float32)

    params = {
        "wh": 0.1 * jax.random.normal(k_wh, (E, M), dtype=jnp.float32),
        "bh": 0.1 * jax.random.normal(k_bh, (M,), dtype=jnp.float32),
        "wd": 0.1 * jax.random.normal(k_wd, (E, M), dtype=jnp.float32),
        "bd": 0.1 * jax.random.normal(k_bd, (M,), dtype=jnp.float32),
        # Bilinear weight U: (labels_dim, mlp_dim + 1, mlp_dim + 1)  (bias_x, bias_y)
        "U": 0.1 * jax.random.normal(k_u, (L, M + 1, M + 1), dtype=jnp.float32),
    }

    # indexes[0,:] = sentence index, indexes[1,:] = token index; heads = head positions.
    sent_idx = jnp.repeat(jnp.arange(B, dtype=jnp.int32), S)
    tok_idx = jnp.tile(jnp.arange(S, dtype=jnp.int32), B)
    indexes = jnp.stack([sent_idx, tok_idx], axis=0)  # (2, N)
    heads = jax.random.randint(k_heads, (N,), 0, S, dtype=jnp.int32)

    out = label_biaffine_forward(h, indexes, heads, params, tn=256)
    out = jax.block_until_ready(out)

    ref = _reference(h, indexes, heads, params)
    assert out.shape == (N, L)
    # bf16 MXU operands / bf16 gathered activations -> looser tolerance than pure f32.
    assert jnp.allclose(out, ref, atol=5e-2, rtol=5e-2), "mismatch vs. reference"

    print("KERNEL_OK")
</pallas_src>

<mosaic_0001>
module attributes {stable_mosaic.version = 11 : i64} {
  func.func @label_biaffine_kernel(%arg0: i32, %arg1: memref<8x128xbf16, #tpu.memory_space<vmem>>, %arg2: memref<8x128xbf16, #tpu.memory_space<vmem>>, %arg3: memref<128x128xbf16, #tpu.memory_space<vmem>>, %arg4: memref<1x128xf32, #tpu.memory_space<vmem>>, %arg5: memref<128x128xbf16, #tpu.memory_space<vmem>>, %arg6: memref<1x128xf32, #tpu.memory_space<vmem>>, %arg7: memref<8x128x128xbf16, #tpu.memory_space<vmem>>, %arg8: memref<128x8xbf16, #tpu.memory_space<vmem>>, %arg9: memref<128x8xbf16, #tpu.memory_space<vmem>>, %arg10: memref<1x8xf32, #tpu.memory_space<vmem>>, %arg11: memref<8x8xf32, #tpu.memory_space<vmem>>) attributes {dimension_semantics = [#tpu.dimension_semantics<parallel>], iteration_bounds = array<i64: 2>, scalar_prefetch = 0 : i64, scratch_operands = 0 : i64, tpu.core_type = #tpu.core_type<tc>, window_params = [{transform_indices = @transform_0, window_bounds = array<i64: 8, 128>}, {transform_indices = @transform_1, window_bounds = array<i64: 8, 128>}, {pipeline_mode = #tpu.pipeline_mode<synchronous>, transform_indices = @transform_2, window_bounds = array<i64: 128, 128>}, {pipeline_mode = #tpu.pipeline_mode<synchronous>, transform_indices = @transform_3, window_bounds = array<i64: 1, 128>}, {pipeline_mode = #tpu.pipeline_mode<synchronous>, transform_indices = @transform_4, window_bounds = array<i64: 128, 128>}, {pipeline_mode = #tpu.pipeline_mode<synchronous>, transform_indices = @transform_5, window_bounds = array<i64: 1, 128>}, {pipeline_mode = #tpu.pipeline_mode<synchronous>, transform_indices = @transform_6, window_bounds = array<i64: 8, 128, 128>}, {pipeline_mode = #tpu.pipeline_mode<synchronous>, transform_indices = @transform_7, window_bounds = array<i64: 128, 8>}, {pipeline_mode = #tpu.pipeline_mode<synchronous>, transform_indices = @transform_8, window_bounds = array<i64: 128, 8>}, {pipeline_mode = #tpu.pipeline_mode<synchronous>, transform_indices = @transform_9, window_bounds = array<i64: 1, 8>}, {transform_indices = @transform_10, window_bounds = array<i64: 8, 8>}]} {
    %c0 = arith.constant 0 : index
    %c0_0 = arith.constant 0 : index
    %0 = vector.load %arg1[%c0, %c0_0] : memref<8x128xbf16, #tpu.memory_space<vmem>>, vector<8x128xbf16>
    %c0_1 = arith.constant 0 : index
    %c0_2 = arith.constant 0 : index
    %1 = vector.load %arg3[%c0_1, %c0_2] : memref<128x128xbf16, #tpu.memory_space<vmem>>, vector<128x128xbf16>
    %cst = arith.constant dense<0.000000e+00> : vector<8x128xf32>
    %2 = tpu.matmul %0, %1, %cst {dimension_numbers = #tpu.dot_dimension_numbers<[1], [0], [0], [1], [0, 0, 1, 1], [], []>} : vector<8x128xbf16>, vector<128x128xbf16>, vector<8x128xf32> -> vector<8x128xf32>
    %c0_3 = arith.constant 0 : index
    %c0_4 = arith.constant 0 : index
    %3 = vector.load %arg4[%c0_3, %c0_4] : memref<1x128xf32, #tpu.memory_space<vmem>>, vector<1x128xf32>
    %4 = vector.broadcast %3 : vector<1x128xf32> to vector<8x128xf32>
    %5 = arith.addf %2, %4 : vector<8x128xf32>
    %cst_5 = arith.constant 0.000000e+00 : f32
    %6 = vector.broadcast %cst_5 : f32 to vector<8x128xf32>
    %7 = arith.cmpf ogt, %5, %6 : vector<8x128xf32>
    %cst_6 = arith.constant 1.000000e-01 : f32
    %8 = vector.broadcast %cst_6 : f32 to vector<8x128xf32>
    %9 = arith.mulf %8, %5 : vector<8x128xf32>
    %10 = arith.select %7, %5, %9 : vector<8x128xi1>, vector<8x128xf32>
    %c0_7 = arith.constant 0 : index
    %c0_8 = arith.constant 0 : index
    %11 = vector.load %arg2[%c0_7, %c0_8] : memref<8x128xbf16, #tpu.memory_space<vmem>>, vector<8x128xbf16>
    %c0_9 = arith.constant 0 : index
    %c0_10 = arith.constant 0 : index
    %12 = vector.load %arg5[%c0_9, %c0_10] : memref<128x128xbf16, #tpu.memory_space<vmem>>, vector<128x128xbf16>
    %cst_11 = arith.constant dense<0.000000e+00> : vector<8x128xf32>
    %13 = tpu.matmul %11, %12, %cst_11 {dimension_numbers = #tpu.dot_dimension_numbers<[1], [0], [0], [1], [0, 0, 1, 1], [], []>} : vector<8x128xbf16>, vector<128x128xbf16>, vector<8x128xf32> -> vector<8x128xf32>
    %c0_12 = arith.constant 0 : index
    %c0_13 = arith.constant 0 : index
    %14 = vector.load %arg6[%c0_12, %c0_13] : memref<1x128xf32, #tpu.memory_space<vmem>>, vector<1x128xf32>
    %15 = vector.broadcast %14 : vector<1x128xf32> to vector<8x128xf32>
    %16 = arith.addf %13, %15 : vector<8x128xf32>
    %cst_14 = arith.constant 0.000000e+00 : f32
    %17 = vector.broadcast %cst_14 : f32 to vector<8x128xf32>
    %18 = arith.cmpf ogt, %16, %17 : vector<8x128xf32>
    %cst_15 = arith.constant 1.000000e-01 : f32
    %19 = vector.broadcast %cst_15 : f32 to vector<8x128xf32>
    %20 = arith.mulf %19, %16 : vector<8x128xf32>
    %21 = arith.select %18, %16, %20 : vector<8x128xi1>, vector<8x128xf32>
    %22 = arith.truncf %21 : vector<8x128xf32> to vector<8x128xbf16>
    %23 = arith.truncf %10 : vector<8x128xf32> to vector<8x128xbf16>
    %c0_16 = arith.constant 0 : index
    %c0_17 = arith.constant 0 : index
    %c0_18 = arith.constant 0 : index
    %24 = vector.load %arg7[%c0_16, %c0_17, %c0_18] : memref<8x128x128xbf16, #tpu.memory_space<vmem>>, vector<1x128x128xbf16>
    %25 = vector.shape_cast %24 : vector<1x128x128xbf16> to vector<128x128xbf16>
    %cst_19 = arith.constant dense<0.000000e+00> : vector<8x128xf32>
    %26 = tpu.matmul %22, %25, %cst_19 {dimension_numbers = #tpu.dot_dimension_numbers<[1], [0], [0], [1], [0, 0, 1, 1], [], []>} : vector<8x128xbf16>, vector<128x128xbf16>, vector<8x128xf32> -> vector<8x128xf32>
    %27 = arith.mulf %26, %10 : vector<8x128xf32>
    %cst_20 = arith.constant dense<0.000000e+00> : vector<8xf32>
    %28 = vector.multi_reduction <add>, %27, %cst_20 [1] : vector<8x128xf32> to vector<8xf32>
    %29 = vector.shape_cast %28 : vector<8xf32> to vector<8x1xf32>
    %c1 = arith.constant 1 : index
    %c0_21 = arith.constant 0 : index
    %c0_22 = arith.constant 0 : index
    %30 = vector.load %arg7[%c1, %c0_21, %c0_22] : memref<8x128x128xbf16, #tpu.memory_space<vmem>>, vector<1x128x128xbf16>
    %31 = vector.shape_cast %30 : vector<1x128x128xbf16> to vector<128x128xbf16>
    %cst_23 = arith.constant dense<0.000000e+00> : vector<8x128xf32>
    %32 = tpu.matmul %22, %31, %cst_23 {dimension_numbers = #tpu.dot_dimension_numbers<[1], [0], [0], [1], [0, 0, 1, 1], [], []>} : vector<8x128xbf16>, vector<128x128xbf16>, vector<8x128xf32> -> vector<8x128xf32>
    %33 = arith.mulf %32, %10 : vector<8x128xf32>
    %cst_24 = arith.constant dense<0.000000e+00> : vector<8xf32>
    %34 = vector.multi_reduction <add>, %33, %cst_24 [1] : vector<8x128xf32> to vector<8xf32>
    %35 = vector.shape_cast %34 : vector<8xf32> to vector<8x1xf32>
    %c2 = arith.constant 2 : index
    %c0_25 = arith.constant 0 : index
    %c0_26 = arith.constant 0 : index
    %36 = vector.load %arg7[%c2, %c0_25, %c0_26] : memref<8x128x128xbf16, #tpu.memory_space<vmem>>, vector<1x128x128xbf16>
    %37 = vector.shape_cast %36 : vector<1x128x128xbf16> to vector<128x128xbf16>
    %cst_27 = arith.constant dense<0.000000e+00> : vector<8x128xf32>
    %38 = tpu.matmul %22, %37, %cst_27 {dimension_numbers = #tpu.dot_dimension_numbers<[1], [0], [0], [1], [0, 0, 1, 1], [], []>} : vector<8x128xbf16>, vector<128x128xbf16>, vector<8x128xf32> -> vector<8x128xf32>
    %39 = arith.mulf %38, %10 : vector<8x128xf32>
    %cst_28 = arith.constant dense<0.000000e+00> : vector<8xf32>
    %40 = vector.multi_reduction <add>, %39, %cst_28 [1] : vector<8x128xf32> to vector<8xf32>
    %41 = vector.shape_cast %40 : vector<8xf32> to vector<8x1xf32>
    %c3 = arith.constant 3 : index
    %c0_29 = arith.constant 0 : index
    %c0_30 = arith.constant 0 : index
    %42 = vector.load %arg7[%c3, %c0_29, %c0_30] : memref<8x128x128xbf16, #tpu.memory_space<vmem>>, vector<1x128x128xbf16>
    %43 = vector.shape_cast %42 : vector<1x128x128xbf16> to vector<128x128xbf16>
    %cst_31 = arith.constant dense<0.000000e+00> : vector<8x128xf32>
    %44 = tpu.matmul %22, %43, %cst_31 {dimension_numbers = #tpu.dot_dimension_numbers<[1], [0], [0], [1], [0, 0, 1, 1], [], []>} : vector<8x128xbf16>, vector<128x128xbf16>, vector<8x128xf32> -> vector<8x128xf32>
    %45 = arith.mulf %44, %10 : vector<8x128xf32>
    %cst_32 = arith.constant dense<0.000000e+00> : vector<8xf32>
    %46 = vector.multi_reduction <add>, %45, %cst_32 [1] : vector<8x128xf32> to vector<8xf32>
    %47 = vector.shape_cast %46 : vector<8xf32> to vector<8x1xf32>
    %c4 = arith.constant 4 : index
    %c0_33 = arith.constant 0 : index
    %c0_34 = arith.constant 0 : index
    %48 = vector.load %arg7[%c4, %c0_33, %c0_34] : memref<8x128x128xbf16, #tpu.memory_space<vmem>>, vector<1x128x128xbf16>
    %49 = vector.shape_cast %48 : vector<1x128x128xbf16> to vector<128x128xbf16>
    %cst_35 = arith.constant dense<0.000000e+00> : vector<8x128xf32>
    %50 = tpu.matmul %22, %49, %cst_35 {dimension_numbers = #tpu.dot_dimension_numbers<[1], [0], [0], [1], [0, 0, 1, 1], [], []>} : vector<8x128xbf16>, vector<128x128xbf16>, vector<8x128xf32> -> vector<8x128xf32>
    %51 = arith.mulf %50, %10 : vector<8x128xf32>
    %cst_36 = arith.constant dense<0.000000e+00> : vector<8xf32>
    %52 = vector.multi_reduction <add>, %51, %cst_36 [1] : vector<8x128xf32> to vector<8xf32>
    %53 = vector.shape_cast %52 : vector<8xf32> to vector<8x1xf32>
    %c5 = arith.constant 5 : index
    %c0_37 = arith.constant 0 : index
    %c0_38 = arith.constant 0 : index
    %54 = vector.load %arg7[%c5, %c0_37, %c0_38] : memref<8x128x128xbf16, #tpu.memory_space<vmem>>, vector<1x128x128xbf16>
    %55 = vector.shape_cast %54 : vector<1x128x128xbf16> to vector<128x128xbf16>
    %cst_39 = arith.constant dense<0.000000e+00> : vector<8x128xf32>
    %56 = tpu.matmul %22, %55, %cst_39 {dimension_numbers = #tpu.dot_dimension_numbers<[1], [0], [0], [1], [0, 0, 1, 1], [], []>} : vector<8x128xbf16>, vector<128x128xbf16>, vector<8x128xf32> -> vector<8x128xf32>
    %57 = arith.mulf %56, %10 : vector<8x128xf32>
    %cst_40 = arith.constant dense<0.000000e+00> : vector<8xf32>
    %58 = vector.multi_reduction <add>, %57, %cst_40 [1] : vector<8x128xf32> to vector<8xf32>
    %59 = vector.shape_cast %58 : vector<8xf32> to vector<8x1xf32>
    %c6 = arith.constant 6 : index
    %c0_41 = arith.constant 0 : index
    %c0_42 = arith.constant 0 : index
    %60 = vector.load %arg7[%c6, %c0_41, %c0_42] : memref<8x128x128xbf16, #tpu.memory_space<vmem>>, vector<1x128x128xbf16>
    %61 = vector.shape_cast %60 : vector<1x128x128xbf16> to vector<128x128xbf16>
    %cst_43 = arith.constant dense<0.000000e+00> : vector<8x128xf32>
    %62 = tpu.matmul %22, %61, %cst_43 {dimension_numbers = #tpu.dot_dimension_numbers<[1], [0], [0], [1], [0, 0, 1, 1], [], []>} : vector<8x128xbf16>, vector<128x128xbf16>, vector<8x128xf32> -> vector<8x128xf32>
    %63 = arith.mulf %62, %10 : vector<8x128xf32>
    %cst_44 = arith.constant dense<0.000000e+00> : vector<8xf32>
    %64 = vector.multi_reduction <add>, %63, %cst_44 [1] : vector<8x128xf32> to vector<8xf32>
    %65 = vector.shape_cast %64 : vector<8xf32> to vector<8x1xf32>
    %c7 = arith.constant 7 : index
    %c0_45 = arith.constant 0 : index
    %c0_46 = arith.constant 0 : index
    %66 = vector.load %arg7[%c7, %c0_45, %c0_46] : memref<8x128x128xbf16, #tpu.memory_space<vmem>>, vector<1x128x128xbf16>
    %67 = vector.shape_cast %66 : vector<1x128x128xbf16> to vector<128x128xbf16>
    %cst_47 = arith.constant dense<0.000000e+00> : vector<8x128xf32>
    %68 = tpu.matmul %22, %67, %cst_47 {dimension_numbers = #tpu.dot_dimension_numbers<[1], [0], [0], [1], [0, 0, 1, 1], [], []>} : vector<8x128xbf16>, vector<128x128xbf16>, vector<8x128xf32> -> vector<8x128xf32>
    %69 = arith.mulf %68, %10 : vector<8x128xf32>
    %cst_48 = arith.constant dense<0.000000e+00> : vector<8xf32>
    %70 = vector.multi_reduction <add>, %69, %cst_48 [1] : vector<8x128xf32> to vector<8xf32>
    %71 = vector.shape_cast %70 : vector<8xf32> to vector<8x1xf32>
    %72 = tpu.concatenate %29, %35, %41, %47, %53, %59, %65, %71 in 1 : vector<8x1xf32>, vector<8x1xf32>, vector<8x1xf32>, vector<8x1xf32>, vector<8x1xf32>, vector<8x1xf32>, vector<8x1xf32>, vector<8x1xf32> -> vector<8x8xf32>
    %c0_49 = arith.constant 0 : index
    %c0_50 = arith.constant 0 : index
    %73 = vector.load %arg8[%c0_49, %c0_50] : memref<128x8xbf16, #tpu.memory_space<vmem>>, vector<128x8xbf16>
    %cst_51 = arith.constant dense<0.000000e+00> : vector<8x8xf32>
    %74 = tpu.matmul %22, %73, %cst_51 {dimension_numbers = #tpu.dot_dimension_numbers<[1], [0], [0], [1], [0, 0, 1, 1], [], []>} : vector<8x128xbf16>, vector<128x8xbf16>, vector<8x8xf32> -> vector<8x8xf32>
    %75 = arith.addf %72, %74 : vector<8x8xf32>
    %c0_52 = arith.constant 0 : index
    %c0_53 = arith.constant 0 : index
    %76 = vector.load %arg9[%c0_52, %c0_53] : memref<128x8xbf16, #tpu.memory_space<vmem>>, vector<128x8xbf16>
    %cst_54 = arith.constant dense<0.000000e+00> : vector<8x8xf32>
    %77 = tpu.matmul %23, %76, %cst_54 {dimension_numbers = #tpu.dot_dimension_numbers<[1], [0], [0], [1], [0, 0, 1, 1], [], []>} : vector<8x128xbf16>, vector<128x8xbf16>, vector<8x8xf32> -> vector<8x8xf32>
    %78 = arith.addf %75, %77 : vector<8x8xf32>
    %c0_55 = arith.constant 0 : index
    %c0_56 = arith.constant 0 : index
    %79 = vector.load %arg10[%c0_55, %c0_56] : memref<1x8xf32, #tpu.memory_space<vmem>>, vector<1x8xf32>
    %80 = vector.broadcast %79 : vector<1x8xf32> to vector<8x8xf32>
    %81 = arith.addf %78, %80 : vector<8x8xf32>
    %c0_57 = arith.constant 0 : index
    %c0_58 = arith.constant 0 : index
    %82 = vector.load %arg11[%c0_57, %c0_58] : memref<8x8xf32, #tpu.memory_space<vmem>>, vector<8x8xf32>
    tpu.vector_store %arg11[%c0_57, %c0_58], %81 {strides = array<i32>} : memref<8x8xf32, #tpu.memory_space<vmem>>, vector<8x8xf32>,
    return
  }
  func.func @transform_0(%arg0: i32) -> (i32, i32) {
    %c0_i32 = arith.constant 0 : i32
    %c0_i32_0 = arith.constant 0 : i32
    return %arg0, %c0_i32 : i32, i32
  }
  func.func @transform_1(%arg0: i32) -> (i32, i32) {
    %c0_i32 = arith.constant 0 : i32
    %c0_i32_0 = arith.constant 0 : i32
    return %arg0, %c0_i32 : i32, i32
  }
  func.func @transform_2(%arg0: i32) -> (i32, i32) {
    %c0_i32 = arith.constant 0 : i32
    %c0_i32_0 = arith.constant 0 : i32
    %c0_i32_1 = arith.constant 0 : i32
    return %c0_i32, %c0_i32_0 : i32, i32
  }
  func.func @transform_3(%arg0: i32) -> (i32, i32) {
    %c0_i32 = arith.constant 0 : i32
    %c0_i32_0 = arith.constant 0 : i32
    %c0_i32_1 = arith.constant 0 : i32
    return %c0_i32, %c0_i32_0 : i32, i32
  }
  func.func @transform_4(%arg0: i32) -> (i32, i32) {
    %c0_i32 = arith.constant 0 : i32
    %c0_i32_0 = arith.constant 0 : i32
    %c0_i32_1 = arith.constant 0 : i32
    return %c0_i32, %c0_i32_0 : i32, i32
  }
  func.func @transform_5(%arg0: i32) -> (i32, i32) {
    %c0_i32 = arith.constant 0 : i32
    %c0_i32_0 = arith.constant 0 : i32
    %c0_i32_1 = arith.constant 0 : i32
    return %c0_i32, %c0_i32_0 : i32, i32
  }
  func.func @transform_6(%arg0: i32) -> (i32, i32, i32) {
    %c0_i32 = arith.constant 0 : i32
    %c0_i32_0 = arith.constant 0 : i32
    %c0_i32_1 = arith.constant 0 : i32
    %c0_i32_2 = arith.constant 0 : i32
    return %c0_i32, %c0_i32_0, %c0_i32_1 : i32, i32, i32
  }
  func.func @transform_7(%arg0: i32) -> (i32, i32) {
    %c0_i32 = arith.constant 0 : i32
    %c0_i32_0 = arith.constant 0 : i32
    %c0_i32_1 = arith.constant 0 : i32
    return %c0_i32, %c0_i32_0 : i32, i32
  }
  func.func @transform_8(%arg0: i32) -> (i32, i32) {
    %c0_i32 = arith.constant 0 : i32
    %c0_i32_0 = arith.constant 0 : i32
    %c0_i32_1 = arith.constant 0 : i32
    return %c0_i32, %c0_i32_0 : i32, i32
  }
  func.func @transform_9(%arg0: i32) -> (i32, i32) {
    %c0_i32 = arith.constant 0 : i32
    %c0_i32_0 = arith.constant 0 : i32
    %c0_i32_1 = arith.constant 0 : i32
    return %c0_i32, %c0_i32_0 : i32, i32
  }
  func.func @transform_10(%arg0: i32) -> (i32, i32) {
    %c0_i32 = arith.constant 0 : i32
    %c0_i32_0 = arith.constant 0 : i32
    return %arg0, %c0_i32 : i32, i32
  }
}

</mosaic_0001>

<bundles_post_ra>
// kernel: tpu_custom_call.1
= control target key start
LH: loop header
LB: loop body
LE: loop exit
PB: predicated region body
PF: predicated region fallthrough
CT: control target
= control target key end

     0   :  { %s2420_s0 = inlined_call_operand.vmem [shape: bf16[16,128], index: 0, kind: input, shape index: {}]   ;;  %s2421_s1 = inlined_call_operand.hbm [shape: bf16[16,128], index: 1, kind: input, shape index: {}]   ;;  %s2422_s2 = inlined_call_operand.vmem [shape: bf16[128,128], index: 2, kind: input, shape index: {}]   ;;  %s2423_s3 = inlined_call_operand.vmem [shape: f32[1,128], index: 3, kind: input, shape index: {}]   ;;  %s2424_s4 = inlined_call_operand.vmem [shape: bf16[128,128], index: 4, kind: input, shape index: {}]   ;;  %s2425_s5 = inlined_call_operand.vmem [shape: f32[1,128], index: 5, kind: input, shape index: {}]   ;;  %s2426_s6 = inlined_call_operand.hbm [shape: bf16[8,128,128], index: 6, kind: input, shape index: {}]   ;;  %s2427_s7 = inlined_call_operand.vmem [shape: bf16[128,8], index: 7, kind: input, shape index: {}]   ;;  %s2428_s8 = inlined_call_operand.vmem [shape: bf16[128,8], index: 8, kind: input, shape index: {}]   ;;  %s2429_s9 = inlined_call_operand.vmem [shape: f32[1,8], index: 9, kind: input, shape index: {}]   ;;  %s2430_s10 = inlined_call_operand.vmem [shape: f32[16,8], index: 10, kind: output, shape index: {}]  }
   0x1   :  { %2431 = sst [smem:[#allocation8_spill]] %s2426_s6 }
   0x2   :  { %15 = vsyncpa [#allocation3], 0 }
   0x3   :  { %17 = vsyncpa [#allocation3 + $0x1], 0 }
   0x4   :  { %18 = vsyncpa [#allocation5], 0  ;;  %s2200_s13 = smov 0   ;;  %s2202_s14 = smov 0  }
   0x5   :  { %s2204_s15 = smov 0   ;;  %s2206_s16 = smov 0  }
   0x6 LB: > { %s2432_s6 = sld [smem:[#allocation8_spill]]  ;;  %s2222_s20 = sadd.s32 4294967295, %s2140_s16   ;;  %s2140_s16 = sphi %s2206_s16, %s2439_s16   ;;  %s2136_s15 = sphi %s2204_s15, %s2438_s15   ;;  %s2132_s14 = sphi %s2202_s14, %s2437_s14   ;;  %s2128_s13 = sphi %s2200_s13, %s2436_s13  }
   0x7   : > { %p1495_p0 = scmp.ge.s32.totalorder %s2140_s16, 1  ;;  %p71_p1 = scmp.eq.s32.totalorder %s2222_s20, 0 }
   0x8   : > { %p275_p2 = scmp.lt.s32.totalorder %s2140_s16, 3  ;;  %s2142_s22 = smov [#allocation4]  }
   0x9   : > { %s300_s23 = sshll.u32 %s2142_s22, 4  ;;  %s2143_s24 = smov 64   ;;  %s301_s23 = int_to_ptr.vmem [resolvable:$true] %s300_s23 }
   0xa   : > { %p2227_p3 = pnand %p1495_p0, %p275_p2  ;;  %s2144_s25 = smov 4  }
   0xb   : > { %s2236_s26 = sadd.s32 1, %s2140_s16   ;;  %s57_s28 = sadd.s32 1, %s2136_s15 }
   0xc   : > { %s298_s19 = sshll.u32 %s2432_s6, 4  ;;  %p1993_p4 = pneg %p2227_p3  ;;  %s299_s19 = int_to_ptr.hbm [resolvable:$true] %s298_s19 }
   0xd   : > { %s54_s27 = ssub.s32 %s2140_s16, %s2236_s26  ;;  %p64_p7 = scmp.ne.s32.totalorder %s2136_s15, %s2132_s14 }
   0xe   : > { %p1994_p5 = pnand %p1993_p4, %p71_p1  ;;  %p55_p6 = scmp.eq.s32.totalorder %s54_s27, 0 }
   0xf   : > { %p65_p8 = scmp.eq.s32.totalorder %s2140_s16, 0  ;;  %p70_p9 = scmp.ne.s32.totalorder %s2132_s14, %s2128_s13 }
  0x10   : > { %1996 = dma.hbm_to_vmem [thread:$0]  (!%p1994_p5), %s299_s19, 8192, %s301_s23, [#allocation5], %s2143_s24, %s2143_s24, %s2144_s25  }
  0x11   : > { %s2246_s29 = scalar_select %p55_p6, %s2136_s15, %s57_s28  }
  0x12   : > { %p66_p10 = por %p65_p8, %p64_p7  ;;  %p2250_p11 = por %p71_p1, %p70_p9 }
  0x13   : > { %p2002_p12 = scmp.lt.s32.totalorder %s2140_s16, 2  ;;  %s330_s11 = sand.u32 1, %s2136_s15  }
  0x14   : > { %s1498_s12 = sshll.u32 %s330_s11, 2  ;;  %s1499_s17 = sshll.u32 %s2140_s16, 2 }
  0x15   : > { %s338_s22 = scalar_lea.hbm %s2421_s1, %s1499_s17  ;;  %s334_s23 = scalar_lea.vmem [#allocation2], %s1498_s12 }
  0x16   : > { %s342_s24 = sshll.u32 %s334_s23, 4  ;;  %s340_s25 = sshll.u32 %s338_s22, 4  ;;  %s343_s24 = int_to_ptr.vmem [resolvable:$true] %s342_s24  ;;  %s341_s25 = int_to_ptr.hbm [resolvable:$true] %s340_s25 }
  0x17   : > { %p2260_p13 = pnand %p2002_p12, %p66_p10  ;;  %s331_s27 = scalar_lea.sflag [#allocation3], %s330_s11 }
  0x18   : > { %s2072_s28 = sshra.s32 %s341_s25, 4  ;;  %s2079_s17 = scalar_lea.hbm %s2421_s1, 8  ;;  %s2073_s28 = int_to_ptr.hbm [resolvable:$true] %s2072_s28 }
  0x19   : > { %s2074_s6 = scalar_lea.hbm %s2073_s28, 4  ;;  %p2076_p2 = pneg %p2260_p13 }
  0x1a   : > { %p2075_p0 = scmp.ne.s32.totalorder %s2073_s28, %s2074_s6  ;;  %p2080_p6 = scmp.lt.s32.totalorder %s2073_s28, %s2421_s1 }
  0x1b   : > { %p2081_p7 = scmp.lt.s32.totalorder %s2079_s17, %s2074_s6 }
  0x1c   : > { %p2077_p4 = pnand %p2076_p2, %p2075_p0 }
  0x1d   : > { %p2082_p8 = por %p2081_p7, %p2080_p6 }
  0x1e   : > { %p2078_p5 = pneg %p2077_p4 }
  0x20   : > { %p2083_p9 = pnand %p2082_p8, %p2078_p5 }
  0x22   : > { %2086 = shalt.err (!%p2083_p9)
}
  0x23   : > { %2000 = dma.hbm_to_vmem [thread:$0]  (!%p2260_p13), %s341_s25, 64, %s343_s24, %s331_s27  }
  0x24   : > { %351 = sbr.rel (%p2227_p3) target bundleno = 493 (0x1ed), region = 60  ;;  %s353_s11 = sand.u32 (!%p2227_p3), 1, %s2132_s14  }
  0x25   : > { %s2277_s22 = sshll.u32 (!%p2227_p3), %s353_s11, 2  ;;  %s354_s23 = scalar_lea.sflag (!%p2227_p3), [#allocation3], %s353_s11 }
  0x26   : > { %s357_s16 = scalar_lea.vmem (!%p2227_p3), [#allocation2], %s2277_s22 }
  0x29   : > { %2119 = dma.done.wait (%p2250_p11), %s354_s23, 64  }
  0x2a   : > { %2121 = vsyncadd (%p2250_p11), %s354_s23, 4294967232 }
  0x2b   : > { %2123 = dma.done.wait (%p71_p1), [#allocation5], 8192  }
  0x2c   : > { %2125 = vsyncadd (%p71_p1), [#allocation5], 4294959104  ;;  %v1906_v0 = vld [vmem:[%s2424_s4 + $0x38] sm:$0xff]  ;;  %v1905_v1 = vld [vmem:[%s2424_s4 + $0x30] sm:$0xff]  ;;  %p403_p1 = scmp.lt.s32.totalorder %s2222_s20, 1  ;;  %vm1230_vm2 = vcmask 7168  }
  0x2d   : > { %565 = vmatpush.bf16.msra.mxu1 %v1906_v0  ;;  %v1898_v2 = vld [vmem:[%s2422_s2 + $0x38] sm:$0xff]  ;;  %v1914_v3 = vld [vmem:[#allocation4 + $0x38] sm:$0xff]  ;;  %v1897_v4 = vld [vmem:[%s2422_s2 + $0x30] sm:$0xff]  ;;  %vm1232_vm3 = vcmask 15360   ;;  %vm1234_vm4 = vcmask 23552   ;;  %vm1236_vm5 = vcmask 31744  }
  0x2e   : > { %480 = vmatpush.bf16.msra.mxu0 %v1898_v2  ;;  %v1904_v5 = vld [vmem:[%s2424_s4 + $0x28] sm:$0xff]  ;;  %647 = vmatpush.bf16.msra.mxu2 %v1914_v3  ;;  %v1913_v6 = vld [vmem:[#allocation4 + $0x30] sm:$0xff]  ;;  %v1922_v7 = vld [vmem:[#allocation4 + $0x78] sm:$0xff]  ;;  %s2441_s20 = smov (!%p403_p1, %s2222_s20), 1  ;;  %vm1238_vm6 = vcmask 39936   ;;  %vm1240_vm7 = vcmask 48128  }
  0x2f   : > { %v1896_v8 = vld [vmem:[%s2422_s2 + $0x28] sm:$0xff]  ;;  %728 = vmatpush.bf16.msra.mxu3 %v1922_v7  ;;  %v1921_v9 = vld [vmem:[#allocation4 + $0x70] sm:$0xff]  ;;  %v1903_v10 = vld [vmem:[%s2424_s4 + $0x20] sm:$0xff]  ;;  %s1503_s24 = sshll.u32 %s2441_s20, 2  ;;  %vm1242_vm8 = vcmask 56320   ;;  %s1504_s18 = sshll.u32 %s2441_s20, 3 }
  0x30   : > { %v1912_v11 = vld [vmem:[#allocation4 + $0x28] sm:$0xff]  ;;  %v1895_v12 = vld [vmem:[%s2422_s2 + $0x20] sm:$0xff]  ;;  %v1902_v14 = vld [vmem:[%s2424_s4 + $0x18] sm:$0xff]  ;;  %s406_s28 = scalar_lea.vmem %s2420_s0, %s1503_s24  ;;  %s410_s21 = scalar_lea.vmem %s2430_s10, %s1504_s18  ;;  %vm1405_vm9 = vcmask 64512  }
  0x31   : > { %566 = vmatpush.bf16.msra.mxu1 %v1905_v1  ;;  %v1920_v13 = vld [vmem:[#allocation4 + $0x68] sm:$0xff]  ;;  %v1911_v15 = vld [vmem:[#allocation4 + $0x20] sm:$0xff]  ;;  %v1894_v16 = vld [vmem:[%s2422_s2 + $0x18] sm:$0xff] }
  0x32   : > { %481 = vmatpush.bf16.msra.mxu0 %v1897_v4  ;;  %648 = vmatpush.bf16.msra.mxu2 %v1913_v6  ;;  %v1919_v17 = vld [vmem:[#allocation4 + $0x60] sm:$0xff]  ;;  %v1901_v18 = vld [vmem:[%s2424_s4 + $0x10] sm:$0xff]  ;;  %v1910_v19 = vld [vmem:[#allocation4 + $0x18] sm:$0xff] }
  0x33   : > { %729 = vmatpush.bf16.msra.mxu3 %v1921_v9  ;;  %v1893_v20 = vld [vmem:[%s2422_s2 + $0x10] sm:$0xff]  ;;  %v1918_v21 = vld [vmem:[#allocation4 + $0x58] sm:$0xff]  ;;  %v1900_v22 = vld [vmem:[%s2424_s4 + $0x8] sm:$0xff] }
  0x34   : > { %v1909_v23 = vld [vmem:[#allocation4 + $0x10] sm:$0xff]  ;;  %v1892_v24 = vld [vmem:[%s2422_s2 + $0x8] sm:$0xff]  ;;  %v1899_v26 = vld [vmem:[%s2424_s4] sm:$0xff] }
  0x35   : > { %567 = vmatpush.bf16.msra.mxu1 %v1904_v5  ;;  %v1917_v25 = vld [vmem:[#allocation4 + $0x50] sm:$0xff]  ;;  %v1908_v27 = vld [vmem:[#allocation4 + $0x8] sm:$0xff]  ;;  %v1938_v28 = vld [vmem:[#allocation4 + $0xf8] sm:$0xff] }
  0x36   : > { %482 = vmatpush.bf16.msra.mxu0 %v1896_v8  ;;  %649 = vmatpush.bf16.msra.mxu2 %v1912_v11  ;;  %v1891_v29 = vld [vmem:[%s2422_s2] sm:$0xff]  ;;  %v1907_v32 = vld [vmem:[#allocation4] sm:$0xff]  ;;  %v1937_v33 = vld [vmem:[#allocation4 + $0xf0] sm:$0xff] }
  0x37   : > { %730 = vmatpush.bf16.msra.mxu3 %v1920_v13  ;;  %v496_v30 = vld [vmem:[%s357_s16] sm:$0xf]  ;;  %v1916_v35 = vld [vmem:[#allocation4 + $0x48] sm:$0xff]  ;;  %v1929_v37 = vld [vmem:[#allocation4 + $0xb0] sm:$0xff] }
  0x38   : > { %v1930_v31 = vld [vmem:[#allocation4 + $0xb8] sm:$0xff]  ;;  %v1936_v38 = vld [vmem:[#allocation4 + $0xe8] sm:$0xff]  ;;  %v1945_v39 = vld [vmem:[#allocation4 + $0x130] sm:$0xff] }
  0x39   : > { %568 = vmatpush.bf16.msra.mxu1 %v1903_v10  ;;  %v1946_v34 = vld [vmem:[#allocation4 + $0x138] sm:$0xff]  ;;  %v1915_v40 = vld [vmem:[#allocation4 + $0x40] sm:$0xff]  ;;  %v1928_v42 = vld [vmem:[#allocation4 + $0xa8] sm:$0xff] }
  0x3a   : > { %483 = vmatpush.bf16.msra.mxu0 %v1895_v12  ;;  %650 = vmatpush.bf16.msra.mxu2 %v1911_v15  ;;  %v411_v36 = vld [vmem:[%s406_s28] sm:$0xf]  ;;  %v1935_v43 = vld [vmem:[#allocation4 + $0xe0] sm:$0xff]  ;;  %v1944_v44 = vld [vmem:[#allocation4 + $0x128] sm:$0xff] }
  0x3b   : > { %731 = vmatpush.bf16.msra.mxu3 %v1919_v17  ;;  %v1954_v41 = vld [vmem:[#allocation4 + $0x178] sm:$0xff]  ;;  %v1953_v45 = vld [vmem:[#allocation4 + $0x170] sm:$0xff]  ;;  %v1927_v46 = vld [vmem:[#allocation4 + $0xa0] sm:$0xff] }
  0x3c   : > { %v1934_v47 = vld [vmem:[#allocation4 + $0xd8] sm:$0xff]  ;;  %v1943_v48 = vld [vmem:[#allocation4 + $0x120] sm:$0xff]  ;;  %v1933_v50 = vld [vmem:[#allocation4 + $0xd0] sm:$0xff] }
  0x3d   : > { %569 = vmatpush.bf16.msra.mxu1 %v1902_v14  ;;  %v1926_v49 = vld [vmem:[#allocation4 + $0x98] sm:$0xff]  ;;  %v1925_v52 = vld [vmem:[#allocation4 + $0x90] sm:$0xff]  ;;  %v1932_v53 = vld [vmem:[#allocation4 + $0xc8] sm:$0xff] }
  0x3e   : > { %484 = vmatpush.bf16.msra.mxu0 %v1894_v16  ;;  %651 = vmatpush.bf16.msra.mxu2 %v1910_v19  ;;  %v1942_v51 = vld [vmem:[#allocation4 + $0x118] sm:$0xff]  ;;  %v1924_v54 = vld [vmem:[#allocation4 + $0x88] sm:$0xff]  ;;  %v1931_v55 = vld [vmem:[#allocation4 + $0xc0] sm:$0xff] }
  0x3f   : > { %732 = vmatpush.bf16.msra.mxu3 %v1918_v21  ;;  %v1970_v56 = vld [vmem:[#allocation4 + $0x1f8] sm:$0xff]  ;;  %v1923_v57 = vld [vmem:[#allocation4 + $0x80] sm:$0xff]  ;;  %v1969_v59 = vld [vmem:[#allocation4 + $0x1f0] sm:$0xff] }
  0x40   : > { %v1962_v58 = vld [vmem:[#allocation4 + $0x1b8] sm:$0xff]  ;;  %v1961_v60 = vld [vmem:[#allocation4 + $0x1b0] sm:$0xff]  ;;  %v1952_v62 = vld [vmem:[#allocation4 + $0x168] sm:$0xff] }
  0x41   : > { %570 = vmatpush.bf16.msra.mxu1 %v1901_v18  ;;  %v1941_v61 = vld [vmem:[#allocation4 + $0x110] sm:$0xff]  ;;  %v1960_v63 = vld [vmem:[#allocation4 + $0x1a8] sm:$0xff]  ;;  %v1951_v2 = vld [vmem:[#allocation4 + $0x160] sm:$0xff] }
  0x42   : > { %485 = vmatpush.bf16.msra.mxu0 %v1893_v20  ;;  %652 = vmatpush.bf16.msra.mxu2 %v1909_v23  ;;  %v1968_v0 = vld [vmem:[#allocation4 + $0x1e8] sm:$0xff]  ;;  %v1959_v3 = vld [vmem:[#allocation4 + $0x1a0] sm:$0xff]  ;;  %v1950_v6 = vld [vmem:[#allocation4 + $0x158] sm:$0xff] }
  0x43   : > { %733 = vmatpush.bf16.msra.mxu3 %v1917_v25  ;;  %v1940_v1 = vld [vmem:[#allocation4 + $0x108] sm:$0xff]  ;;  %v1967_v4 = vld [vmem:[#allocation4 + $0x1e0] sm:$0xff]  ;;  %v1958_v7 = vld [vmem:[#allocation4 + $0x198] sm:$0xff] }
  0x44   : > { %v1939_v5 = vld [vmem:[#allocation4 + $0x100] sm:$0xff]  ;;  %v1966_v8 = vld [vmem:[#allocation4 + $0x1d8] sm:$0xff]  ;;  %v1949_v9 = vld [vmem:[#allocation4 + $0x150] sm:$0xff] }
  0x45   : > { %571 = vmatpush.bf16.msra.mxu1 %v1900_v22  ;;  %v1957_v10 = vld [vmem:[#allocation4 + $0x190] sm:$0xff]  ;;  %v1948_v12 = vld [vmem:[#allocation4 + $0x148] sm:$0xff]  ;;  %v1947_v15 = vld [vmem:[#allocation4 + $0x140] sm:$0xff] }
  0x46   : > { %486 = vmatpush.bf16.msra.mxu0 %v1892_v24  ;;  %653 = vmatpush.bf16.msra.mxu2 %v1908_v27  ;;  %v1965_v11 = vld [vmem:[#allocation4 + $0x1d0] sm:$0xff]  ;;  %v1956_v13 = vld [vmem:[#allocation4 + $0x188] sm:$0xff]  ;;  %v1955_v16 = vld [vmem:[#allocation4 + $0x180] sm:$0xff] }
  0x47   : > { %734 = vmatpush.bf16.msra.mxu3 %v1916_v35  ;;  %v1964_v14 = vld [vmem:[#allocation4 + $0x1c8] sm:$0xff]  ;;  %v1963_v17 = vld [vmem:[#allocation4 + $0x1c0] sm:$0xff]  ;;  %v2039_v18 = vld [vmem:[%s2425_s5] ss:$0 sm:$0xff] }
  0x48   : > { %v1978_v24 = vld [vmem:[%s2427_s7 + $0x38] sm:$0xff] }
  0x49   : > { %572 = vmatpush.bf16.msra.mxu1 %v1899_v26  ;;  %v1986_v26 = vld [vmem:[%s2428_s8 + $0x38] sm:$0xff] }
  0x4a   : > { %487 = vmatpush.bf16.msra.mxu0 %v1891_v29  ;;  %654 = vmatpush.bf16.msra.mxu2 %v1907_v32  ;;  %v1985_v29 = vld [vmem:[%s2428_s8 + $0x30] sm:$0xff]  ;;  %v1974_v35 = vld [vmem:[%s2427_s7 + $0x18] sm:$0xff] }
  0x4b   : > { %735 = vmatpush.bf16.msra.mxu3 %v1915_v40  ;;  %v1981_v40 = vld [vmem:[%s2428_s8 + $0x10] sm:$0xff] }
  0x4c   : > { %573 = vmatmul.bf16.vlgmr.msra.gmra.mxu1 %v496_v30  ;;  %v1976_v30 = vld [vmem:[%s2427_s7 + $0x28] sm:$0xff] }
  0x4d   : > { %890 = vmatpush.bf16.msrb.mxu1 %v1938_v28  ;;  %488 = vmatmul.bf16.vlgmr.msra.gmra.mxu0 %v411_v36  ;;  %v1977_v28 = vld [vmem:[%s2427_s7 + $0x30] sm:$0xff]  ;;  %v1982_v36 = vld [vmem:[%s2428_s8 + $0x18] sm:$0xff] }
  0x4e   : > { %809 = vmatpush.bf16.msrb.mxu0 %v1930_v31  ;;  %971 = vmatpush.bf16.msrb.mxu2 %v1946_v34  ;;  %v1984_v31 = vld [vmem:[%s2428_s8 + $0x28] sm:$0xff]  ;;  %v1983_v34 = vld [vmem:[%s2428_s8 + $0x20] sm:$0xff] }
  0x4f   : > { %1052 = vmatpush.bf16.msrb.mxu3 %v1954_v41  ;;  %v1972_v41 = vld [vmem:[%s2427_s7 + $0x8] sm:$0xff] }
  0x51   : > { %891 = vmatpush.bf16.msrb.mxu1 %v1937_v33  ;;  %v1975_v33 = vld [vmem:[%s2427_s7 + $0x20] sm:$0xff] }
  0x52   : > { %810 = vmatpush.bf16.msrb.mxu0 %v1929_v37  ;;  %972 = vmatpush.bf16.msrb.mxu2 %v1945_v39  ;;  %v2040_v37 = vld [vmem:[%s2423_s3] ss:$0 sm:$0xff] }
  0x53   : > { %1053 = vmatpush.bf16.msrb.mxu3 %v1953_v45 }
  0x55   : > { %892 = vmatpush.bf16.msrb.mxu1 %v1936_v38  ;;  %v1973_v38 = vld [vmem:[%s2427_s7 + $0x10] sm:$0xff] }
  0x56   : > { %811 = vmatpush.bf16.msrb.mxu0 %v1928_v42  ;;  %973 = vmatpush.bf16.msrb.mxu2 %v1944_v44  ;;  %v1971_v44 = vld [vmem:[%s2427_s7] sm:$0xff] }
  0x57   : > { %1054 = vmatpush.bf16.msrb.mxu3 %v1952_v62 }
  0x59   : > { %893 = vmatpush.bf16.msrb.mxu1 %v1935_v43  ;;  %v1980_v43 = vld [vmem:[%s2428_s8 + $0x8] sm:$0xff] }
  0x5a   : > { %812 = vmatpush.bf16.msrb.mxu0 %v1927_v46  ;;  %974 = vmatpush.bf16.msrb.mxu2 %v1943_v48  ;;  %v1979_v46 = vld [vmem:[%s2428_s8] sm:$0xff] }
  0x5b   : > { %1055 = vmatpush.bf16.msrb.mxu3 %v1951_v2 }
  0x5d   : > { %894 = vmatpush.bf16.msrb.mxu1 %v1934_v47 }
  0x5e   : > { %813 = vmatpush.bf16.msrb.mxu0 %v1926_v49  ;;  %975 = vmatpush.bf16.msrb.mxu2 %v1942_v51 }
  0x5f   : > { %1056 = vmatpush.bf16.msrb.mxu3 %v1950_v6 }
  0x61   : > { %895 = vmatpush.bf16.msrb.mxu1 %v1933_v50 }
  0x62   : > { %814 = vmatpush.bf16.msrb.mxu0 %v1925_v52  ;;  %976 = vmatpush.bf16.msrb.mxu2 %v1941_v61 }
  0x63   : > { %1057 = vmatpush.bf16.msrb.mxu3 %v1949_v9 }
  0x65   : > { %896 = vmatpush.bf16.msrb.mxu1 %v1932_v53 }
  0x66   : > { %815 = vmatpush.bf16.msrb.mxu0 %v1924_v54  ;;  %977 = vmatpush.bf16.msrb.mxu2 %v1940_v1 }
  0x67   : > { %1058 = vmatpush.bf16.msrb.mxu3 %v1948_v12 }
  0x69   : > { %897 = vmatpush.bf16.msrb.mxu1 %v1931_v55 }
  0x6a   : > { %816 = vmatpush.bf16.msrb.mxu0 %v1923_v57  ;;  %978 = vmatpush.bf16.msrb.mxu2 %v1939_v5 }
  0x6b   : > { %1059 = vmatpush.bf16.msrb.mxu3 %v1947_v15 }
  0x6d   : > { %1214 = vmatpush.bf16.msra.mxu1 %v1970_v56 }
  0x6e   : > { %1133 = vmatpush.bf16.msra.mxu0 %v1962_v58 }
  0x71   : > { %1215 = vmatpush.bf16.msra.mxu1 %v1969_v59 }
  0x72   : > { %1134 = vmatpush.bf16.msra.mxu0 %v1961_v60 }
  0x75   : > { %1216 = vmatpush.bf16.msra.mxu1 %v1968_v0 }
  0x76   : > { %1135 = vmatpush.bf16.msra.mxu0 %v1960_v63 }
  0x79   : > { %1217 = vmatpush.bf16.msra.mxu1 %v1967_v4 }
  0x7a   : > { %1136 = vmatpush.bf16.msra.mxu0 %v1959_v3 }
  0x7d   : > { %1218 = vmatpush.bf16.msra.mxu1 %v1966_v8 }
  0x7e   : > { %1137 = vmatpush.bf16.msra.mxu0 %v1958_v7 }
  0x81   : > { %1219 = vmatpush.bf16.msra.mxu1 %v1965_v11 }
  0x82   : > { %1138 = vmatpush.bf16.msra.mxu0 %v1957_v10 }
  0x85   : > { %1220 = vmatpush.bf16.msra.mxu1 %v1964_v14 }
  0x86   : > { %1139 = vmatpush.bf16.msra.mxu0 %v1956_v13 }
  0x89   : > { %1221 = vmatpush.bf16.msra.mxu1 %v1963_v17 }
  0x8a   : > { %1140 = vmatpush.bf16.msra.mxu0 %v1955_v16 }
  0xc9   : > { %v574_v19 = vpop.f32.mrf.mxu1 }
  0xca   : > { %v575_v20 = vadd.f32 %v2039_v18, %v574_v19  ;;  %v489_v27 = vpop.f32.mrf.mxu0 }
  0xcb   : > { %v490_v39 = vadd.f32 %v2040_v37, %v489_v27  ;;  %v2041_v27 = vld [vmem:[%s2429_s9] ss:$0 sm:$0xff] }
  0xcc   : > { %vm578_vm0 = vcmp.gt.f32.partialorder %v575_v20, 0.0  ;;  %v579_v21 = vmul.f32 0.1, %v575_v20 }
  0xcd   : > { %v494_v42 = vmul.f32 0.1, %v490_v39  ;;  %vm493_vm1 = vcmp.gt.f32.partialorder %v490_v39, 0.0 }
  0xce   : > { %v580_v22 = vsel %vm578_vm0, %v575_v20, %v579_v21 }
  0xcf   : > { %v581_v23 = vpack.c.bf16 %v580_v22, %v580_v22  ;;  %v495_v45 = vsel %vm493_vm1, %v490_v39, %v494_v42 }
  0xd0   : > { %v582_v47 = vpack.c.bf16 %v495_v45, %v495_v45 }
  0xd1   : > { %v576_v25 = vpop.f32.mrf.mxu1  ;;  %655 = vmatmul.bf16.vlgmr.msra.gmra.mxu2 %v581_v23  ;;  %736 = vmatmul.bf16.vlgmr.msra.gmra.mxu3 %v581_v23 }
  0xd2   : > { %817 = vmatmul.bf16.vlgmr.msrb.gmra.mxu0 %v581_v23  ;;  %898 = vmatmul.bf16.vlgmr.msrb.gmra.mxu1 %v581_v23  ;;  %v491_v32 = vpop.f32.mrf.mxu0 }
  0xd3   : > { %1308 = vmatpush.bf16.msra.mxu2 %v1978_v24  ;;  %1386 = vmatpush.bf16.msra.mxu3 %v1986_v26 }
  0xd7   : > { %1309 = vmatpush.bf16.msra.mxu2 %v1977_v28  ;;  %1387 = vmatpush.bf16.msra.mxu3 %v1985_v29 }
  0xdb   : > { %1310 = vmatpush.bf16.msra.mxu2 %v1976_v30  ;;  %1388 = vmatpush.bf16.msra.mxu3 %v1984_v31 }
  0xdf   : > { %1311 = vmatpush.bf16.msra.mxu2 %v1975_v33  ;;  %1389 = vmatpush.bf16.msra.mxu3 %v1983_v34 }
  0xe1   : > { %979 = vmatmul.bf16.vlgmr.msrb.gmra.mxu2 %v581_v23  ;;  %1060 = vmatmul.bf16.vlgmr.msrb.gmra.mxu3 %v581_v23 }
  0xe2   : > { %1141 = vmatmul.bf16.vlgmr.msra.gmra.mxu0 %v581_v23  ;;  %1222 = vmatmul.bf16.vlgmr.msra.gmra.mxu1 %v581_v23 }
  0xe3   : > { %1312 = vmatpush.bf16.msra.mxu2 %v1974_v35  ;;  %1390 = vmatpush.bf16.msra.mxu3 %v1982_v36 }
  0xe7   : > { %1313 = vmatpush.bf16.msra.mxu2 %v1973_v38  ;;  %1391 = vmatpush.bf16.msra.mxu3 %v1981_v40 }
  0xeb   : > { %1314 = vmatpush.bf16.msra.mxu2 %v1972_v41  ;;  %1392 = vmatpush.bf16.msra.mxu3 %v1980_v43 }
  0xef   : > { %1315 = vmatpush.bf16.msra.mxu2 %v1971_v44  ;;  %1393 = vmatpush.bf16.msra.mxu3 %v1979_v46 }
  0xf2   : > { %1316 = vmatmul.bf16.vlgmr.msra.gmra.mxu2 %v581_v23  ;;  %1394 = vmatmul.bf16.vlgmr.msra.gmra.mxu3 %v582_v47 }
 0x14f   : > { %v818_v48 = vpop.f32.mrf.mxu0  ;;  %v899_v49 = vpop.f32.mrf.mxu1 }
 0x150   : > { %v822_v50 = vmul.f32 %v818_v48, %v495_v45  ;;  %v903_v56 = vmul.f32 %v899_v49, %v495_v45 }
 0x152   : > { %823 = vadd.xlane.f32.xlu1 %v822_v50 }
 0x154   : > { %v656_v51 = vpop.f32.mrf.mxu2  ;;  %v737_v52 = vpop.f32.mrf.mxu3 }
 0x155   : > { %v660_v53 = vmul.f32 %v656_v51, %v495_v45  ;;  %v741_v59 = vmul.f32 %v737_v52, %v495_v45 }
 0x157   : > { %v820_v54 = vpop.f32.mrf.mxu0  ;;  %v901_v55 = vpop.f32.mrf.mxu1  ;;  %661 = vadd.xlane.f32.xlu0 %v660_v53 }
 0x15a   : > { %904 = vadd.xlane.f32.xlu1 %v903_v56 }
 0x15c   : > { %v658_v57 = vpop.f32.mrf.mxu2  ;;  %v739_v58 = vpop.f32.mrf.mxu3 }
 0x15f   : > { %v1142_v60 = vpop.f32.mrf.mxu0  ;;  %v1223_v61 = vpop.f32.mrf.mxu1  ;;  %742 = vadd.xlane.f32.xlu0 %v741_v59 }
 0x160   : > { %v1227_v62 = vmul.f32 %v1223_v61, %v495_v45  ;;  %v1146_v1 = vmul.f32 %v1142_v60, %v495_v45 }
 0x162   : > { %1228 = vadd.xlane.f32.xlu1 %v1227_v62 }
 0x164   : > { %v980_v63 = vpop.f32.mrf.mxu2  ;;  %v1061_v0 = vpop.f32.mrf.mxu3 }
 0x165   : > { %v984_v2 = vmul.f32 %v980_v63, %v495_v45  ;;  %v1065_v7 = vmul.f32 %v1061_v0, %v495_v45 }
 0x167   : > { %v1144_v3 = vpop.f32.mrf.mxu0  ;;  %v1225_v4 = vpop.f32.mrf.mxu1  ;;  %985 = vadd.xlane.f32.xlu2 %v984_v2  ;;  %1147 = vadd.xlane.f32.xlu0 %v1146_v1 }
 0x16c   : > { %v982_v5 = vpop.f32.mrf.mxu2  ;;  %v1063_v6 = vpop.f32.mrf.mxu3 }
 0x16f   : > { %1066 = vadd.xlane.f32.xlu2 %v1065_v7 }
 0x175   : > { %v1317_v8 = vpop.f32.mrf.mxu2  ;;  %v1395_v10 = vpop.f32.mrf.mxu3 }
 0x17d   : > { %v1319_v9 = vpop.f32.mrf.mxu2  ;;  %v1397_v11 = vpop.f32.mrf.mxu3 }
 0x1c5   : > { %v824_v13 = vpop.xlane.xlu1 %823 }
 0x1ca   : > { %v662_v12 = vpop.xlane.xlu0 %661 }
 0x1cd   : > { %v905_v15 = vpop.xlane.xlu1 %904 }
 0x1d2   : > { %v743_v14 = vpop.xlane.xlu0 %742 }
 0x1d3   : > { %v1231_v17 = vsel %vm1230_vm2, %v662_v12, %v743_v14 }
 0x1d4   : > { %v1233_v18 = vsel %vm1232_vm3, %v1231_v17, %v824_v13 }
 0x1d5   : > { %v1235_v19 = vsel %vm1234_vm4, %v1233_v18, %v905_v15  ;;  %v1229_v24 = vpop.xlane.xlu1 %1228 }
 0x1da   : > { %v986_v16 = vpop.xlane.xlu2 %985  ;;  %v1148_v22 = vpop.xlane.xlu0 %1147 }
 0x1db   : > { %v1237_v20 = vsel %vm1236_vm5, %v1235_v19, %v986_v16 }
 0x1e2   : > { %v1067_v21 = vpop.xlane.xlu2 %1066 }
 0x1e3   : > { %v1239_v23 = vsel %vm1238_vm6, %v1237_v20, %v1067_v21 }
 0x1e4   : > { %v1241_v25 = vsel %vm1240_vm7, %v1239_v23, %v1148_v22 }
 0x1e5   : > { %v1243_v26 = vsel %vm1242_vm8, %v1241_v25, %v1229_v24 }
 0x1e6   : > { %v1321_v28 = vadd.f32 %v1317_v8, %v1243_v26 }
 0x1e8   : > { %v1399_v29 = vadd.f32 %v1395_v10, %v1321_v28 }
 0x1ea   : > { %v1404_v30 = vadd.f32 %v2041_v27, %v1399_v29 }
 0x1ec   : > { %1406 = vst.msk [vmem:[%s410_s21] sm:$0xff] %vm1405_vm9, %v1404_v30 }
 0x1ed PF: > { %p21_p3 = scmp.ge.s32.totalorder %s2236_s26, 4   ;;  %s2436_s13 = smov %s2132_s14 }
 0x1ee   : > { %s2437_s14 = smov %s2136_s15  ;;  %s2438_s15 = smov %s2246_s29 }
 0x1ef   : > { %s2439_s16 = smov %s2236_s26  ;;  %23 = sbr.rel (!%p21_p3) target bundleno = 6 (0x6), region = 114 }
 0x1f4   :  { %1426 = vsyncpa [#allocation3], 1 }
 0x1f5   :  { %1428 = vsyncpa [#allocation3 + $0x1], 1 }
 0x1f6   :  { %1429 = vsyncpa [#allocation5], 1 }

</bundles_post_ra>
